<compile_context>
chip_gen: v7x
topology: tpu7x:2x2x1
jax: 0.10.0
libtpu: 0.0.40
codegen_flags: <defaults>
</compile_context>

<pallas_src>
import jax
import jax.numpy as jnp
from jax import lax
from jax.experimental import pallas as pl
from jax.experimental.pallas import tpu as pltpu


# ---------------------------------------------------------------------------
# Helpers
# ---------------------------------------------------------------------------
def _round_up(v, m):
    return ((v + m - 1) // m) * m


def _vmem_limit_bytes():
    """Generation-aware scoped-VMEM limit (<=64 MiB on 128 MiB parts, ~48 MiB on v7x)."""
    try:
        cap = int(pltpu.get_tpu_info().vmem_capacity_bytes)
    except Exception:
        cap = 64 * 1024 * 1024          # conservative: v7x per-TC physical VMEM
    return min(64 * 1024 * 1024, (cap * 3) // 4)


# ---------------------------------------------------------------------------
# Kernel 1: fused single-pass LayerNorm (one sample per grid step).
#   x block: (1, D0, D1); gamma/beta blocks: (D0, 1)
#   Works for both the row-flattened view (D0=R, D1=128, per-row affine) and
#   the channel view (D0=C, D1=HW, per-channel affine).
# ---------------------------------------------------------------------------
def _make_fused_kernel(n_elems, eps):
    inv_n = 1.0 / float(n_elems)
    inv_nm1 = 1.0 / float(max(n_elems - 1, 1))   # torch .std() is unbiased (N-1)

    def kernel(x_ref, g_ref, b_ref, o_ref):
        x = x_ref[0].astype(jnp.float32)                    # (D0, D1)
        s = jnp.sum(x, keepdims=True)                       # (1, 1)
        mean = s * inv_n
        d = x - mean
        # Two-step variance (x - mean)^2: x is VMEM-resident so this extra
        # elementwise pass is free of HBM traffic and avoids cancellation.
        var = jnp.sum(d * d, keepdims=True) * inv_nm1       # (1, 1)
        std = jnp.sqrt(jnp.maximum(var, 0.0))
        rstd = 1.0 / (std + eps)                            # 1 / (std + eps)
        scale = g_ref[...] * rstd                           # (D0, 1)
        o_ref[0] = (d * scale + b_ref[...]).astype(o_ref.dtype)

    return kernel


def _fused_layer_norm(xv, gv, bv, n_elems, eps, vmem_limit):
    B, D0, D1 = xv.shape
    return pl.pallas_call(
        _make_fused_kernel(n_elems, eps),
        out_shape=jax.ShapeDtypeStruct((B, D0, D1), xv.dtype),
        grid_spec=pltpu.PrefetchScalarGridSpec(
            num_scalar_prefetch=0,
            grid=(B,),
            in_specs=[pl.BlockSpec((1, D0, D1), lambda b: (b, 0, 0)),
                      pl.BlockSpec((D0, 1), lambda b: (0, 0)),
                      pl.BlockSpec((D0, 1), lambda b: (0, 0))],
            out_specs=pl.BlockSpec((1, D0, D1), lambda b: (b, 0, 0))),
        compiler_params=pltpu.CompilerParams(
            dimension_semantics=("parallel",),
            vmem_limit_bytes=vmem_limit),
    )(xv, gv, bv)


# ---------------------------------------------------------------------------
# Kernel 2: per-sample statistics, streamed over row tiles (two-pass fallback).
#   x viewed as (B, R, 128); grid (B, n_tiles); accumulator output pattern.
# ---------------------------------------------------------------------------
def _make_stats_kernel(n_rows, tile_rows, n_elems, eps):
    inv_n = 1.0 / float(n_elems)
    inv_nm1 = 1.0 / float(max(n_elems - 1, 1))
    ragged = (n_rows % tile_rows) != 0

    def kernel(x_ref, stats_ref, sum_acc, sq_acc):
        t = pl.program_id(1)

        @pl.when(t == 0)
        def _init():
            sum_acc[...] = jnp.zeros_like(sum_acc)
            sq_acc[...] = jnp.zeros_like(sq_acc)

        x = x_ref[0].astype(jnp.float32)                    # (tile_rows, 128)
        if ragged:
            # Mask rows past the end of the sample (boundary block of the grid)
            # so they contribute nothing to sum / sum-of-squares.
            valid = n_rows - t * tile_rows
            rows = lax.broadcasted_iota(jnp.int32, (tile_rows, 128), 0)
            x = jnp.where(rows < valid, x, 0.0)

        # Pure VPU accumulation per tile; cross-lane reduce only in finalize.
        sum_acc[...] += jnp.sum(x, axis=0, keepdims=True)   # (1, 128)
        sq_acc[...] += jnp.sum(x * x, axis=0, keepdims=True)

        @pl.when(t == pl.num_programs(1) - 1)
        def _finalize():
            s = jnp.sum(sum_acc[...], keepdims=True)        # (1, 1)
            q = jnp.sum(sq_acc[...], keepdims=True)         # (1, 1)
            mean = s * inv_n
            # NOTE: single-pass E[x^2] - N*mean^2; fine for activation-scale
            # data (the fused path uses the two-step formula).
            var = (q - s * mean) * inv_nm1
            std = jnp.sqrt(jnp.maximum(var, 0.0))
            rstd = 1.0 / (std + eps)
            stats_ref[0, 0:1, :] = jnp.broadcast_to(mean, (1, 128))
            stats_ref[0, 1:2, :] = jnp.broadcast_to(rstd, (1, 128))

    return kernel


# ---------------------------------------------------------------------------
# Kernel 3: streaming normalize, y = x * scale + shift (per batch & row).
# ---------------------------------------------------------------------------
def _norm_rows_kernel(x_ref, scale_ref, shift_ref, o_ref):
    x = x_ref[0].astype(jnp.float32)                        # (tile_rows, 128)
    o_ref[0] = (x * scale_ref[0] + shift_ref[0]).astype(o_ref.dtype)


# ---------------------------------------------------------------------------
# Wrapper
# ---------------------------------------------------------------------------
def layer_norm(x, gamma, beta, eps=1e-5, *, force_two_pass=False,
               max_rows_per_tile=None):
    """Pallas TPU LayerNorm: y = (x - mean_b) / (std_b + eps) * gamma_c + beta_c.

    x: (B, C, H, W); gamma, beta: (C,).  (affine=False == gamma=ones, beta=zeros)
    """
    B, C, H, W = x.shape
    HW = H * W
    N = C * HW

    g = gamma.astype(jnp.float32)
    bt = beta.astype(jnp.float32)

    vmem_limit = _vmem_limit_bytes()
    bytes_in = N * x.dtype.itemsize
    # double-buffered in+out blocks + a few f32 temporaries must fit comfortably
    use_fused = (not force_two_pass) and (4 * bytes_in + 4 * N * 4) <= vmem_limit // 2
    row_aligned = (HW % 128 == 0)

    # ---------------- fused single-pass path ----------------
    if use_fused:
        if row_aligned:
            R = N // 128
            xv = x.reshape(B, R, 128)                       # free reshape
            rep = HW // 128
            gv = jnp.repeat(g, rep).reshape(R, 1)           # per-row affine
            bv = jnp.repeat(bt, rep).reshape(R, 1)
        else:
            xv = x.reshape(B, C, HW)                        # free reshape, no pad
            gv = g.reshape(C, 1)
            bv = bt.reshape(C, 1)
        y = _fused_layer_norm(xv, gv, bv, N, eps, vmem_limit)
        return y.reshape(B, C, H, W)

    # ---------------- two-pass streaming fallback ----------------
    if row_aligned:
        HWp = HW
        xv = x.reshape(B, N // 128, 128)
    else:
        # TODO(synk): tail-mask the last lane chunk in-kernel instead of the
        # pad + slice HBM round trips for huge non-128-aligned spatial sizes.
        HWp = _round_up(HW, 128)
        xv = jnp.pad(x.reshape(B, C, HW), ((0, 0), (0, 0), (0, HWp - HW)))
        xv = xv.reshape(B, C * HWp // 128, 128)

    R = C * HWp // 128
    rep = HWp // 128
    gv = jnp.repeat(g, rep).reshape(R, 1)
    bv = jnp.repeat(bt, rep).reshape(R, 1)

    default_rows = 8192 if vmem_limit >= 56 * 1024 * 1024 else 4096
    Tr = default_rows if max_rows_per_tile is None else max_rows_per_tile
    Tr = min(_round_up(R, 8), _round_up(max(Tr, 8), 8))
    n_tiles = pl.cdiv(R, Tr)

    # Pass 1: per-sample (mean, 1/(std+eps)), lane-broadcast into (B, 2, 128).
    stats = pl.pallas_call(
        _make_stats_kernel(R, Tr, N, eps),
        out_shape=jax.ShapeDtypeStruct((B, 2, 128), jnp.float32),
        grid_spec=pltpu.PrefetchScalarGridSpec(
            num_scalar_prefetch=0,
            grid=(B, n_tiles),
            in_specs=[pl.BlockSpec((1, Tr, 128), lambda b, t: (b, t, 0))],
            out_specs=pl.BlockSpec((1, 2, 128), lambda b, t: (b, 0, 0)),
            scratch_shapes=[pltpu.VMEM((1, 128), jnp.float32),
                            pltpu.VMEM((1, 128), jnp.float32)]),
        compiler_params=pltpu.CompilerParams(
            dimension_semantics=("parallel", "arbitrary"),
            vmem_limit_bytes=vmem_limit),
    )(xv)

    # Tiny XLA step: fold affine into per-(batch,row) scale/shift so pass 2 is
    # a single broadcast FMA with only two small extra operand streams.
    mean = stats[:, 0:1, 0:1]                               # (B, 1, 1)
    rstd = stats[:, 1:2, 0:1]                               # (B, 1, 1)
    scale = gv[None, :, :] * rstd                           # (B, R, 1)
    shift = bv[None, :, :] - mean * scale                   # (B, R, 1)

    # Pass 2: streaming normalize + affine.
    y = pl.pallas_call(
        _norm_rows_kernel,
        out_shape=jax.ShapeDtypeStruct((B, R, 128), x.dtype),
        grid_spec=pltpu.PrefetchScalarGridSpec(
            num_scalar_prefetch=0,
            grid=(B, n_tiles),
            in_specs=[pl.BlockSpec((1, Tr, 128), lambda b, t: (b, t, 0)),
                      pl.BlockSpec((1, Tr, 1), lambda b, t: (b, t, 0)),
                      pl.BlockSpec((1, Tr, 1), lambda b, t: (b, t, 0))],
            out_specs=pl.BlockSpec((1, Tr, 128), lambda b, t: (b, t, 0))),
        compiler_params=pltpu.CompilerParams(
            dimension_semantics=("parallel", "parallel"),
            vmem_limit_bytes=vmem_limit),
    )(xv, scale, shift)

    if not row_aligned:
        y = y.reshape(B, C, HWp)[:, :, :HW]
    return y.reshape(B, C, H, W)


def _reference(x, gamma, beta, eps=1e-5):
    # Pure-JAX reference matching the PyTorch module (unbiased std, eps on std).
    B = x.shape[0]
    xf = x.reshape(B, -1)
    mean = xf.mean(axis=1).reshape(B, 1, 1, 1)
    std = jnp.sqrt(xf.var(axis=1, ddof=1)).reshape(B, 1, 1, 1)
    y = (x - mean) / (std + eps)
    return y * gamma.reshape(1, -1, 1, 1) + beta.reshape(1, -1, 1, 1)


if __name__ == "__main__":
    eps = 1e-5
    key = jax.random.PRNGKey(0)
    kx, kg, kx2, kx3 = jax.random.split(key, 4)

    # Main case (matches the torch module usage): fused row-flattened path.
    B, C, H, W = 2, 4, 16, 16
    x = jax.random.normal(kx, (B, C, H, W), dtype=jnp.float32)
    gamma = jax.random.uniform(kg, (C,), dtype=jnp.float32)   # torch: .uniform_()
    beta = jnp.zeros((C,), dtype=jnp.float32)                 # torch: zeros

    out = jax.block_until_ready(layer_norm(x, gamma, beta, eps))
    ref = _reference(x, gamma, beta, eps)
    assert out.shape == x.shape
    assert jnp.allclose(out, ref, atol=1e-4, rtol=1e-4), \
        float(jnp.max(jnp.abs(out - ref)))

    # Fused channel-layout path (HW not a multiple of 128 -> no pad/slice).
    x2 = jax.random.normal(kx2, (2, 3, 10, 10), dtype=jnp.float32)
    g2 = jax.random.uniform(kg, (3,), dtype=jnp.float32)
    b2 = jnp.zeros((3,), dtype=jnp.float32)
    o2 = jax.block_until_ready(layer_norm(x2, g2, b2, eps))
    r2 = _reference(x2, g2, b2, eps)
    assert jnp.allclose(o2, r2, atol=1e-4, rtol=1e-4), \
        float(jnp.max(jnp.abs(o2 - r2)))

    # Two-pass streaming fallback, forced with small tiles so the grid-level
    # accumulator reduction actually gets exercised.
    x3 = jax.random.normal(kx3, (2, 4, 32, 32), dtype=jnp.float32)
    o3 = jax.block_until_ready(
        layer_norm(x3, gamma, beta, eps, force_two_pass=True, max_rows_per_tile=8))
    r3 = _reference(x3, gamma, beta, eps)
    assert jnp.allclose(o3, r3, atol=1e-4, rtol=1e-4), \
        float(jnp.max(jnp.abs(o3 - r3)))

    print("KERNEL_OK")
</pallas_src>

<mosaic_0001>
module attributes {stable_mosaic.version = 11 : i64} {
  func.func @kernel(%arg0: i32, %arg1: memref<1x8x128xf32, #tpu.memory_space<vmem>>, %arg2: memref<8x1xf32, #tpu.memory_space<vmem>>, %arg3: memref<8x1xf32, #tpu.memory_space<vmem>>, %arg4: memref<1x8x128xf32, #tpu.memory_space<vmem>>) attributes {dimension_semantics = [#tpu.dimension_semantics<parallel>], iteration_bounds = array<i64: 2>, scalar_prefetch = 0 : i64, scratch_operands = 0 : i64, tpu.core_type = #tpu.core_type<tc>, window_params = [{transform_indices = @transform_0, window_bounds = array<i64: 1, 8, 128>}, {pipeline_mode = #tpu.pipeline_mode<synchronous>, transform_indices = @transform_1, window_bounds = array<i64: 8, 1>}, {pipeline_mode = #tpu.pipeline_mode<synchronous>, transform_indices = @transform_2, window_bounds = array<i64: 8, 1>}, {transform_indices = @transform_3, window_bounds = array<i64: 1, 8, 128>}]} {
    %c0 = arith.constant 0 : index
    %c0_0 = arith.constant 0 : index
    %c0_1 = arith.constant 0 : index
    %0 = vector.load %arg1[%c0, %c0_0, %c0_1] : memref<1x8x128xf32, #tpu.memory_space<vmem>>, vector<1x8x128xf32>
    %1 = vector.shape_cast %0 : vector<1x8x128xf32> to vector<8x128xf32>
    %2 = vector.shape_cast %1 : vector<8x128xf32> to vector<1x8x128xf32>
    %cst = arith.constant dense<0.000000e+00> : vector<1xf32>
    %3 = vector.multi_reduction <add>, %2, %cst [1, 2] : vector<1x8x128xf32> to vector<1xf32>
    %4 = vector.shape_cast %3 : vector<1xf32> to vector<1x1x1xf32>
    %5 = vector.extract %4[0, 0, 0] : f32 from vector<1x1x1xf32>
    %6 = vector.broadcast %5 : f32 to vector<1x1xf32>
    %cst_2 = arith.constant 9.765625E-4 : f32
    %7 = vector.broadcast %cst_2 : f32 to vector<1x1xf32>
    %8 = arith.mulf %6, %7 : vector<1x1xf32>
    %9 = vector.broadcast %8 : vector<1x1xf32> to vector<8x128xf32>
    %10 = arith.subf %1, %9 : vector<8x128xf32>
    %11 = arith.mulf %10, %10 : vector<8x128xf32>
    %12 = vector.shape_cast %11 : vector<8x128xf32> to vector<1x8x128xf32>
    %cst_3 = arith.constant dense<0.000000e+00> : vector<1xf32>
    %13 = vector.multi_reduction <add>, %12, %cst_3 [1, 2] : vector<1x8x128xf32> to vector<1xf32>
    %14 = vector.shape_cast %13 : vector<1xf32> to vector<1x1x1xf32>
    %15 = vector.extract %14[0, 0, 0] : f32 from vector<1x1x1xf32>
    %16 = vector.broadcast %15 : f32 to vector<1x1xf32>
    %cst_4 = arith.constant 9.77517105E-4 : f32
    %17 = vector.broadcast %cst_4 : f32 to vector<1x1xf32>
    %18 = arith.mulf %16, %17 : vector<1x1xf32>
    %cst_5 = arith.constant 0.000000e+00 : f32
    %19 = vector.broadcast %cst_5 : f32 to vector<1x1xf32>
    %20 = arith.maximumf %18, %19 : vector<1x1xf32>
    %21 = math.sqrt %20 : vector<1x1xf32>
    %cst_6 = arith.constant 9.99999974E-6 : f32
    %22 = vector.broadcast %cst_6 : f32 to vector<1x1xf32>
    %23 = arith.addf %21, %22 : vector<1x1xf32>
    %cst_7 = arith.constant 1.000000e+00 : f32
    %24 = vector.broadcast %cst_7 : f32 to vector<1x1xf32>
    %25 = arith.divf %24, %23 : vector<1x1xf32>
    %c0_8 = arith.constant 0 : index
    %c0_9 = arith.constant 0 : index
    %26 = vector.load %arg2[%c0_8, %c0_9] : memref<8x1xf32, #tpu.memory_space<vmem>>, vector<8x1xf32>
    %27 = vector.broadcast %25 : vector<1x1xf32> to vector<8x1xf32>
    %28 = arith.mulf %26, %27 : vector<8x1xf32>
    %29 = vector.broadcast %28 : vector<8x1xf32> to vector<8x128xf32>
    %30 = arith.mulf %10, %29 : vector<8x128xf32>
    %c0_10 = arith.constant 0 : index
    %c0_11 = arith.constant 0 : index
    %31 = vector.load %arg3[%c0_10, %c0_11] : memref<8x1xf32, #tpu.memory_space<vmem>>, vector<8x1xf32>
    %32 = vector.broadcast %31 : vector<8x1xf32> to vector<8x128xf32>
    %33 = arith.addf %30, %32 : vector<8x128xf32>
    %c0_12 = arith.constant 0 : index
    %c0_13 = arith.constant 0 : index
    %c0_14 = arith.constant 0 : index
    %34 = vector.load %arg4[%c0_12, %c0_13, %c0_14] : memref<1x8x128xf32, #tpu.memory_space<vmem>>, vector<1x8x128xf32>
    %35 = vector.shape_cast %34 : vector<1x8x128xf32> to vector<8x128xf32>
    %36 = vector.shape_cast %33 : vector<8x128xf32> to vector<1x8x128xf32>
    tpu.vector_store %arg4[%c0_12, %c0_13, %c0_14], %36 {strides = array<i32>} : memref<1x8x128xf32, #tpu.memory_space<vmem>>, vector<1x8x128xf32>,
    return
  }
  func.func @transform_0(%arg0: i32) -> (i32, i32, i32) {
    %c0_i32 = arith.constant 0 : i32
    %c0_i32_0 = arith.constant 0 : i32
    %c0_i32_1 = arith.constant 0 : i32
    return %arg0, %c0_i32, %c0_i32_0 : i32, i32, i32
  }
  func.func @transform_1(%arg0: i32) -> (i32, i32) {
    %c0_i32 = arith.constant 0 : i32
    %c0_i32_0 = arith.constant 0 : i32
    %c0_i32_1 = arith.constant 0 : i32
    return %c0_i32, %c0_i32_0 : i32, i32
  }
  func.func @transform_2(%arg0: i32) -> (i32, i32) {
    %c0_i32 = arith.constant 0 : i32
    %c0_i32_0 = arith.constant 0 : i32
    %c0_i32_1 = arith.constant 0 : i32
    return %c0_i32, %c0_i32_0 : i32, i32
  }
  func.func @transform_3(%arg0: i32) -> (i32, i32, i32) {
    %c0_i32 = arith.constant 0 : i32
    %c0_i32_0 = arith.constant 0 : i32
    %c0_i32_1 = arith.constant 0 : i32
    return %arg0, %c0_i32, %c0_i32_0 : i32, i32, i32
  }
}

</mosaic_0001>

<bundles_post_ra>
// kernel: tpu_custom_call.1
= control target key start
LH: loop header
LB: loop body
LE: loop exit
PB: predicated region body
PF: predicated region fallthrough
CT: control target
= control target key end

     0   :  { %8 = vsyncpa [#allocation3], 0  ;;  %s543_s0 = inlined_call_operand.vmem [shape: f32[2,8,128], index: 0, kind: input, shape index: {}]   ;;  %s544_s1 = inlined_call_operand.vmem [shape: f32[8,1], index: 1, kind: input, shape index: {}]   ;;  %s545_s2 = inlined_call_operand.vmem [shape: f32[8,1], index: 2, kind: input, shape index: {}]   ;;  %s546_s3 = inlined_call_operand.hbm [shape: f32[2,8,128], index: 3, kind: output, shape index: {}]  }
   0x1   :  { %10 = vsyncpa [#allocation3 + $0x1], 0  ;;  %s437_s12 = smov 0   ;;  %s439_s13 = smov 0  }
   0x2   :  { %s441_s14 = smov 0   ;;  %s443_s15 = smov 0  }
   0x3 LB: > { %s458_s16 = sadd.s32 4294967295, %s413_s15   ;;  %s291_s17 = sadd.s32 4294967294, %s413_s15   ;;  %s413_s15 = sphi %s443_s15, %s552_s15   ;;  %s409_s14 = sphi %s441_s14, %s551_s14   ;;  %s405_s13 = sphi %s439_s13, %s550_s13   ;;  %s401_s12 = sphi %s437_s12, %s549_s12  }
   0x4   : > { %s462_s18 = sadd.s32 1, %s413_s15   ;;  %s91_s19 = sadd.s32 1, %s409_s14 }
   0x5   : > { %s88_s20 = ssub.s32 %s413_s15, %s462_s18  ;;  %p101_p0 = scmp.ne.s32.totalorder %s409_s14, %s405_s13 }
   0x6   : > { %p89_p1 = scmp.eq.s32.totalorder %s88_s20, 0  ;;  %p102_p2 = scmp.eq.s32.totalorder %s458_s16, 1 }
   0x7   : > { %p107_p3 = scmp.ne.s32.totalorder %s405_s13, %s401_s12  ;;  %p108_p4 = scmp.eq.s32.totalorder %s291_s17, 1 }
   0x8   : > { %s473_s21 = scalar_select %p89_p1, %s409_s14, %s91_s19  }
   0x9   : > { %p475_p5 = por %p102_p2, %p101_p0  ;;  %p479_p6 = por %p108_p4, %p107_p3 }
   0xa   : > { %p294_p7 = scmp.ge.s32.totalorder %s413_s15, 1  ;;  %p139_p8 = scmp.lt.s32.totalorder %s413_s15, 3 }
   0xc   : > { %p140_p9 = pnand %p294_p7, %p139_p8 }
   0xd   : > { %p162_p10 = scmp.lt.s32.totalorder (!%p140_p9), %s458_s16, 1  ;;  %v415_v12 = vmov (!%p140_p9), 0   ;;  %v202_v29 = vld [vmem:[%s544_s1] sm:$0xff] (!%p140_p9)  ;;  %s159_s8 = sand.u32 (!%p140_p9), 1, %s405_s13  }
   0xe   : > { %143 = sbr.rel (%p140_p9) target bundleno = 624 (0x270), region = 32  ;;  %345 = vset.pattern.permute.xlu1 (!%p140_p9), %v415_v12  ;;  %346 = vset.pattern.permute.xlu0 (!%p140_p9), %v415_v12  ;;  %v210_v32 = vld [vmem:[%s545_s2] sm:$0xff] (!%p140_p9)  ;;  %s295_s9 = sshll.u32 (!%p140_p9), %s159_s8, 3 }
   0xf   : > { %s298_s10 = sshll.u32 (!%p140_p9), %s458_s16, 7  ;;  %s161_s11 = scalar_lea.vmem (!%p140_p9), [#allocation2], %s295_s9 }
  0x10   : > { %s232_s17 = sshll.u32 (!%p140_p9), %s161_s11, 4  ;;  %s503_s17 = int_to_ptr.vmem [resolvable:$true] %s232_s17 }
  0x11   : > { %s351_s26 = scalar_lea.vmem (!%p140_p9), %s503_s17, 128 }
  0x12   : > { %p352_p11 = scmp.ne.s32.totalorder (!%p140_p9), %s503_s17, %s351_s26 }
  0x14   : > { %p353_p12 = pnand (!%p140_p9), %p352_p11, %p475_p5 }
  0x15   : > { %s163_s24 = scalar_select %p162_p10, %s458_s16, 1 }
  0x16   : > { %p354_p13 = pneg %p353_p12  ;;  %s416_s16 = smov [#allocation2]  }
  0x17   : > { %s296_s25 = sshll.u32 %s163_s24, 3  ;;  %s501_s24 = scalar_lea.hbm %s546_s3, %s298_s10 }
  0x18   : > { %s165_s28 = scalar_lea.vmem %s543_s0, %s296_s25  ;;  %s219_s25 = scalar_lea.sflag [#allocation3], %s159_s8 }
  0x19   : > { %v166_v0 = vld [vmem:[%s165_s28] sm:$0xff]  ;;  %s355_s27 = sshll.u32 %s416_s16, 4  ;;  %s356_s27 = int_to_ptr.vmem [resolvable:$false] %s355_s27 }
  0x1a   : > { %167 = vadd.xlane.f32.xlu0 %v166_v0  ;;  %s357_s28 = scalar_lea.vmem %s356_s27, 256  ;;  %p358_p0 = scmp.lt.s32.totalorder %s503_s17, %s356_s27 }
  0x1b   : > { %p359_p1 = scmp.lt.s32.totalorder %s357_s28, %s351_s26 }
  0x1d   : > { %p360_p2 = por %p359_p1, %p358_p0 }
  0x1f   : > { %p361_p3 = pnand %p360_p2, %p354_p13 }
  0xa7   : > { %v168_v1 = vpop.xlane.xlu0 %167 }
  0xa8   : > { %v169_v2 = vrot.slane %v168_v1, 4 }
  0xaa   : > { %v170_v3 = vadd.f32 %v169_v2, %v168_v1 }
  0xac   : > { %v171_v4 = vrot.slane %v170_v3, 2 }
  0xae   : > { %v172_v5 = vadd.f32 %v171_v4, %v170_v3 }
  0xb0   : > { %v173_v6 = vrot.slane %v172_v5, 1 }
  0xb2   : > { %v174_v7 = vadd.f32 %v173_v6, %v172_v5 }
  0xb4   : > { %301 = vpush %v174_v7 }
  0xe5   : > { %s302_s29 = spop %301 }
  0xe6   : > { %v176_v8 = vstv %s302_s29 }
  0xe7   : > { %v177_v9 = vmul.f32 0.0009765625, %v176_v8 }
  0xe9   : > { %v178_v10 = vsub.f32 %v166_v0, %v177_v9 }
  0xeb   : > { %v179_v11 = vmul.f32 %v178_v10, %v178_v10 }
  0xed   : > { %180 = vadd.xlane.f32.xlu0 %v179_v11 }
 0x17a   : > { %v181_v13 = vpop.xlane.xlu0 %180 }
 0x17b   : > { %v182_v14 = vrot.slane %v181_v13, 4 }
 0x17d   : > { %v183_v15 = vadd.f32 %v182_v14, %v181_v13 }
 0x17f   : > { %v184_v16 = vrot.slane %v183_v15, 2 }
 0x181   : > { %v185_v17 = vadd.f32 %v184_v16, %v183_v15 }
 0x183   : > { %v186_v18 = vrot.slane %v185_v17, 1 }
 0x185   : > { %v187_v19 = vadd.f32 %v186_v18, %v185_v17 }
 0x187   : > { %303 = vpush %v187_v19 }
 0x1b8   : > { %s304_s30 = spop %303 }
 0x1b9   : > { %v189_v20 = vstv %s304_s30 }
 0x1ba   : > { %v190_v21 = vmul.f32 0.0009775171, %v189_v20 }
 0x1bc   : > { %v191_v22 = vmax.f32 %v190_v21, 0.0 }
 0x1be   : > { %347 = vrsqrt.f32 %v191_v22  ;;  %vm194_vm0 = vcmp.eq.f32.partialorder %v191_v22, inf  ;;  %v197_v25 = vand.u32 2147483648, %v191_v22  ;;  %vm196_vm1 = vcmp.eq.f32.partialorder %v191_v22, 0.0 }
 0x1c8   : > { %v348_v23 = vpop.eup %347 }
 0x1c9   : > { %v193_v24 = vmul.f32 %v348_v23, %v191_v22 }
 0x1cb   : > { %v195_v26 = vsel %vm194_vm0, %v191_v22, %v193_v24 }
 0x1cc   : > { %v198_v27 = vsel %vm196_vm1, %v197_v25, %v195_v26 }
 0x1cd   : > { %v199_v28 = vadd.f32 1e-05, %v198_v27 }
 0x1cf   : > { %349 = vrcp.f32 %v199_v28 }
 0x1d9   : > { %v350_v30 = vpop.eup %349 }
 0x1da   : > { %v203_v31 = vmul.f32 %v350_v30, %v202_v29 }
 0x1dc   : > { %206 = vperm.xlu1 %345, %v203_v31  }
 0x1e0   : > { %213 = vperm.xlu1 %345, %v210_v32  }
 0x25b   : > { %v207_v33 = vpop.permute.xlu1 %206 }
 0x25c   : > { %v209_v34 = vmul.f32 %v207_v33, %v178_v10 }
 0x25f   : > { %v214_v35 = vpop.permute.xlu1 %213 }
 0x260   : > { %v216_v36 = vadd.f32 %v214_v35, %v209_v34 }
 0x262   : > { %217 = vst [vmem:[%s161_s11] sm:$0xff] %v216_v36 }
 0x263   : > { %364 = shalt.err (!%p361_p3)
}
 0x264   : > { %s365_s29 = scalar_lea.hbm %s501_s24, 128  ;;  %s369_s5 = scalar_lea.hbm %s546_s3, 256 }
 0x265   : > { %p366_p4 = scmp.ne.s32.totalorder %s501_s24, %s365_s29  ;;  %p370_p9 = scmp.lt.u32.totalorder %s501_s24, %s546_s3 }
 0x266   : > { %p371_p10 = scmp.lt.u32.totalorder %s369_s5, %s365_s29  ;;  %p373_p12 = scmp.lt.u32.totalorder %s365_s29, %s501_s24 }
 0x267   : > { %p367_p7 = pnand %p366_p4, %p475_p5 }
 0x268   : > { %p372_p11 = por %p371_p10, %p370_p9 }
 0x269   : > { %p368_p8 = pneg %p367_p7 }
 0x26a   : > { %p374_p13 = por %p373_p12, %p372_p11 }
 0x26c   : > { %p375_p0 = pnand %p374_p13, %p368_p8 }
 0x26e   : > { %378 = shalt.err (!%p375_p0)
}
 0x26f   : > { %305 = dma.vmem_to_hbm [thread:$0]  (%p475_p5), %s503_s17, 128, %s501_s24, %s219_s25  }
 0x270 PF: > { %p311_p1 = scmp.ge.s32.totalorder %s413_s15, 2  ;;  %s244_s8 = sand.u32 1, %s401_s12  }
 0x271   : > { %s245_s9 = scalar_lea.sflag [#allocation3], %s244_s8 }
 0x272   : > { %p308_p2 = pnand %p311_p1, %p479_p6 }
 0x274   : > { %396 = dma.done.wait (!%p308_p2), %s245_s9, 128  }
 0x275   : > { %398 = vsyncadd (!%p308_p2), %s245_s9, 4294967168  ;;  %p13_p3 = scmp.ge.s32.totalorder %s462_s18, 4   ;;  %s549_s12 = smov %s405_s13 }
 0x276   : > { %s550_s13 = smov %s409_s14  ;;  %s551_s14 = smov %s473_s21 }
 0x277   : > { %s552_s15 = smov %s462_s18  ;;  %15 = sbr.rel (!%p13_p3) target bundleno = 3 (0x3), region = 67 }
 0x27e   :  { %250 = vsyncpa [#allocation3], 1 }
 0x27f   :  { %252 = vsyncpa [#allocation3 + $0x1], 1 }

</bundles_post_ra>
